<compile_context>
chip_gen: v6e
topology: v6e:2x2x1
jax: 0.10.0
libtpu: 0.0.40
codegen_flags: <defaults>
</compile_context>

<pallas_src>
import functools

import jax
import jax.numpy as jnp
from jax.experimental import pallas as pl
from jax.experimental.pallas import tpu as pltpu

NB_BOOKS = 32   # synthetic stand-in for the data-derived nb_books
H1 = 20
H2 = 10
BATCH = 2

LANE = 128
SUBLANE = 8


def _round_up(x, m):
    return (x + m - 1) // m * m


def _pad2(a, rows, cols, dtype):
    r, c = a.shape
    return jnp.pad(a, ((0, rows - r), (0, cols - c))).astype(dtype)


def sae_kernel(x_ref,
               w1_ref, b1_ref,
               w2_ref, b2_ref,
               w3_ref, b3_ref,
               w4_ref, b4_ref,
               o_ref):
    # x / weights are bf16; MXU accumulates in f32; bias-add + sigmoid in f32.
    x = x_ref[...]

    h = jnp.dot(x, w1_ref[...], preferred_element_type=jnp.float32) + b1_ref[...]
    h = jax.nn.sigmoid(h)

    h = jnp.dot(h.astype(jnp.bfloat16), w2_ref[...],
                preferred_element_type=jnp.float32) + b2_ref[...]
    h = jax.nn.sigmoid(h)

    h = jnp.dot(h.astype(jnp.bfloat16), w3_ref[...],
                preferred_element_type=jnp.float32) + b3_ref[...]
    h = jax.nn.sigmoid(h)

    h = jnp.dot(h.astype(jnp.bfloat16), w4_ref[...],
                preferred_element_type=jnp.float32) + b4_ref[...]

    o_ref[...] = h.astype(o_ref.dtype)


@functools.partial(jax.jit, static_argnames=("tm",))
def sae_forward(x, params, *, tm=256):
    """x: (batch, nb_books) f32.  params: w_i as (in, out), b_i as (1, out)."""
    batch, nb_books = x.shape

    # Lane-dense (128-padded) feature dims; sublane-aligned batch tile.
    nbp = _round_up(nb_books, LANE)
    h1p = _round_up(H1, LANE)
    h2p = _round_up(H2, LANE)
    tm = min(tm, _round_up(batch, SUBLANE))
    bp = _round_up(batch, tm)
    grid = (bp // tm,)

    # Pad inputs / weights with zeros (exact math on the valid slice) and
    # cast matmul operands to bf16; biases stay f32 for the f32 bias-add.
    xp = _pad2(x, bp, nbp, jnp.bfloat16)
    w1 = _pad2(params["w1"], nbp, h1p, jnp.bfloat16)
    w2 = _pad2(params["w2"], h1p, h2p, jnp.bfloat16)
    w3 = _pad2(params["w3"], h2p, h1p, jnp.bfloat16)
    w4 = _pad2(params["w4"], h1p, nbp, jnp.bfloat16)
    b1 = _pad2(params["b1"], 1, h1p, jnp.float32)
    b2 = _pad2(params["b2"], 1, h2p, jnp.float32)
    b3 = _pad2(params["b3"], 1, h1p, jnp.float32)
    b4 = _pad2(params["b4"], 1, nbp, jnp.float32)

    def resident(a):
        # Full-array block, same block every grid step -> stays in VMEM.
        return pl.BlockSpec(a.shape, lambda i: (0,) * a.ndim)

    out = pl.pallas_call(
        sae_kernel,
        out_shape=jax.ShapeDtypeStruct((bp, nbp), jnp.bfloat16),
        grid=grid,
        in_specs=[pl.BlockSpec((tm, nbp), lambda i: (i, 0)),
                  resident(w1), resident(b1),
                  resident(w2), resident(b2),
                  resident(w3), resident(b3),
                  resident(w4), resident(b4)],
        out_specs=pl.BlockSpec((tm, nbp), lambda i: (i, 0)),
        compiler_params=pltpu.CompilerParams(
            dimension_semantics=("parallel",),
            vmem_limit_bytes=64 * 1024 * 1024),
    )(xp, w1, b1, w2, b2, w3, b3, w4, b4)

    return out[:batch, :nb_books]


def init_params(key):
    """Deterministic init mimicking nn.Linear default: U(-1/sqrt(fan_in), +)."""
    dims = [(NB_BOOKS, H1), (H1, H2), (H2, H1), (H1, NB_BOOKS)]
    params = {}
    keys = jax.random.split(key, 2 * len(dims))
    for i, (fan_in, fan_out) in enumerate(dims):
        bound = 1.0 / jnp.sqrt(float(fan_in))
        # Stored directly as (in, out) == transpose of PyTorch's (out, in).
        w = jax.random.uniform(keys[2 * i], (fan_in, fan_out),
                               minval=-bound, maxval=bound, dtype=jnp.float32)
        b = jax.random.uniform(keys[2 * i + 1], (1, fan_out),
                               minval=-bound, maxval=bound, dtype=jnp.float32)
        params[f"w{i + 1}"] = w
        params[f"b{i + 1}"] = b
    return params


def sae_reference(x, params):
    """Reference mimicking the kernel's bf16-operand / f32-accumulate math."""
    bf = jnp.bfloat16
    h = jax.nn.sigmoid(jnp.dot(x.astype(bf), params["w1"].astype(bf),
                               preferred_element_type=jnp.float32) + params["b1"])
    h = jax.nn.sigmoid(jnp.dot(h.astype(bf), params["w2"].astype(bf),
                               preferred_element_type=jnp.float32) + params["b2"])
    h = jax.nn.sigmoid(jnp.dot(h.astype(bf), params["w3"].astype(bf),
                               preferred_element_type=jnp.float32) + params["b3"])
    out = jnp.dot(h.astype(bf), params["w4"].astype(bf),
                  preferred_element_type=jnp.float32) + params["b4"]
    return out.astype(bf)


if __name__ == "__main__":
    key = jax.random.PRNGKey(0)
    k_x, k_p = jax.random.split(key)

    # Synthetic "ratings" row per user: values in [0, 5], shape (B, nb_books).
    x = jax.random.uniform(k_x, (BATCH, NB_BOOKS),
                           minval=0.0, maxval=5.0, dtype=jnp.float32)
    params = init_params(k_p)

    out = sae_forward(x, params)
    out = jax.block_until_ready(out)

    ref = sae_reference(x, params)
    assert out.shape == (BATCH, NB_BOOKS)
    assert jnp.allclose(out.astype(jnp.float32), ref.astype(jnp.float32),
                        atol=2e-2, rtol=2e-2), "mismatch vs JAX reference"

    print("KERNEL_OK")
</pallas_src>

<mosaic_0001>
module attributes {stable_mosaic.version = 11 : i64} {
  func.func @sae_kernel(%arg0: i32, %arg1: memref<8x128xbf16, #tpu.memory_space<vmem>>, %arg2: memref<128x128xbf16, #tpu.memory_space<vmem>>, %arg3: memref<1x128xf32, #tpu.memory_space<vmem>>, %arg4: memref<128x128xbf16, #tpu.memory_space<vmem>>, %arg5: memref<1x128xf32, #tpu.memory_space<vmem>>, %arg6: memref<128x128xbf16, #tpu.memory_space<vmem>>, %arg7: memref<1x128xf32, #tpu.memory_space<vmem>>, %arg8: memref<128x128xbf16, #tpu.memory_space<vmem>>, %arg9: memref<1x128xf32, #tpu.memory_space<vmem>>, %arg10: memref<8x128xbf16, #tpu.memory_space<vmem>>) attributes {dimension_semantics = [#tpu.dimension_semantics<parallel>], iteration_bounds = array<i64: 1>, scalar_prefetch = 0 : i64, scratch_operands = 0 : i64, tpu.core_type = #tpu.core_type<tc>, window_params = [{transform_indices = @transform_0, window_bounds = array<i64: 8, 128>}, {pipeline_mode = #tpu.pipeline_mode<synchronous>, transform_indices = @transform_1, window_bounds = array<i64: 128, 128>}, {pipeline_mode = #tpu.pipeline_mode<synchronous>, transform_indices = @transform_2, window_bounds = array<i64: 1, 128>}, {pipeline_mode = #tpu.pipeline_mode<synchronous>, transform_indices = @transform_3, window_bounds = array<i64: 128, 128>}, {pipeline_mode = #tpu.pipeline_mode<synchronous>, transform_indices = @transform_4, window_bounds = array<i64: 1, 128>}, {pipeline_mode = #tpu.pipeline_mode<synchronous>, transform_indices = @transform_5, window_bounds = array<i64: 128, 128>}, {pipeline_mode = #tpu.pipeline_mode<synchronous>, transform_indices = @transform_6, window_bounds = array<i64: 1, 128>}, {pipeline_mode = #tpu.pipeline_mode<synchronous>, transform_indices = @transform_7, window_bounds = array<i64: 128, 128>}, {pipeline_mode = #tpu.pipeline_mode<synchronous>, transform_indices = @transform_8, window_bounds = array<i64: 1, 128>}, {transform_indices = @transform_9, window_bounds = array<i64: 8, 128>}]} {
    %c0 = arith.constant 0 : index
    %c0_0 = arith.constant 0 : index
    %0 = vector.load %arg1[%c0, %c0_0] : memref<8x128xbf16, #tpu.memory_space<vmem>>, vector<8x128xbf16>
    %c0_1 = arith.constant 0 : index
    %c0_2 = arith.constant 0 : index
    %1 = vector.load %arg2[%c0_1, %c0_2] : memref<128x128xbf16, #tpu.memory_space<vmem>>, vector<128x128xbf16>
    %cst = arith.constant dense<0.000000e+00> : vector<8x128xf32>
    %2 = tpu.matmul %0, %1, %cst {dimension_numbers = #tpu.dot_dimension_numbers<[1], [0], [0], [1], [0, 0, 1, 1], [], []>} : vector<8x128xbf16>, vector<128x128xbf16>, vector<8x128xf32> -> vector<8x128xf32>
    %c0_3 = arith.constant 0 : index
    %c0_4 = arith.constant 0 : index
    %3 = vector.load %arg3[%c0_3, %c0_4] : memref<1x128xf32, #tpu.memory_space<vmem>>, vector<1x128xf32>
    %4 = vector.broadcast %3 : vector<1x128xf32> to vector<8x128xf32>
    %5 = arith.addf %2, %4 : vector<8x128xf32>
    %6 = arith.negf %5 : vector<8x128xf32>
    %7 = math.exp %6 : vector<8x128xf32>
    %cst_5 = arith.constant 1.000000e+00 : f32
    %8 = vector.broadcast %cst_5 : f32 to vector<8x128xf32>
    %9 = arith.addf %8, %7 : vector<8x128xf32>
    %10 = arith.divf %8, %9 : vector<8x128xf32>
    %11 = arith.truncf %10 : vector<8x128xf32> to vector<8x128xbf16>
    %c0_6 = arith.constant 0 : index
    %c0_7 = arith.constant 0 : index
    %12 = vector.load %arg4[%c0_6, %c0_7] : memref<128x128xbf16, #tpu.memory_space<vmem>>, vector<128x128xbf16>
    %cst_8 = arith.constant dense<0.000000e+00> : vector<8x128xf32>
    %13 = tpu.matmul %11, %12, %cst_8 {dimension_numbers = #tpu.dot_dimension_numbers<[1], [0], [0], [1], [0, 0, 1, 1], [], []>} : vector<8x128xbf16>, vector<128x128xbf16>, vector<8x128xf32> -> vector<8x128xf32>
    %c0_9 = arith.constant 0 : index
    %c0_10 = arith.constant 0 : index
    %14 = vector.load %arg5[%c0_9, %c0_10] : memref<1x128xf32, #tpu.memory_space<vmem>>, vector<1x128xf32>
    %15 = vector.broadcast %14 : vector<1x128xf32> to vector<8x128xf32>
    %16 = arith.addf %13, %15 : vector<8x128xf32>
    %17 = arith.negf %16 : vector<8x128xf32>
    %18 = math.exp %17 : vector<8x128xf32>
    %cst_11 = arith.constant 1.000000e+00 : f32
    %19 = vector.broadcast %cst_11 : f32 to vector<8x128xf32>
    %20 = arith.addf %19, %18 : vector<8x128xf32>
    %21 = arith.divf %19, %20 : vector<8x128xf32>
    %22 = arith.truncf %21 : vector<8x128xf32> to vector<8x128xbf16>
    %c0_12 = arith.constant 0 : index
    %c0_13 = arith.constant 0 : index
    %23 = vector.load %arg6[%c0_12, %c0_13] : memref<128x128xbf16, #tpu.memory_space<vmem>>, vector<128x128xbf16>
    %cst_14 = arith.constant dense<0.000000e+00> : vector<8x128xf32>
    %24 = tpu.matmul %22, %23, %cst_14 {dimension_numbers = #tpu.dot_dimension_numbers<[1], [0], [0], [1], [0, 0, 1, 1], [], []>} : vector<8x128xbf16>, vector<128x128xbf16>, vector<8x128xf32> -> vector<8x128xf32>
    %c0_15 = arith.constant 0 : index
    %c0_16 = arith.constant 0 : index
    %25 = vector.load %arg7[%c0_15, %c0_16] : memref<1x128xf32, #tpu.memory_space<vmem>>, vector<1x128xf32>
    %26 = vector.broadcast %25 : vector<1x128xf32> to vector<8x128xf32>
    %27 = arith.addf %24, %26 : vector<8x128xf32>
    %28 = arith.negf %27 : vector<8x128xf32>
    %29 = math.exp %28 : vector<8x128xf32>
    %cst_17 = arith.constant 1.000000e+00 : f32
    %30 = vector.broadcast %cst_17 : f32 to vector<8x128xf32>
    %31 = arith.addf %30, %29 : vector<8x128xf32>
    %32 = arith.divf %30, %31 : vector<8x128xf32>
    %33 = arith.truncf %32 : vector<8x128xf32> to vector<8x128xbf16>
    %c0_18 = arith.constant 0 : index
    %c0_19 = arith.constant 0 : index
    %34 = vector.load %arg8[%c0_18, %c0_19] : memref<128x128xbf16, #tpu.memory_space<vmem>>, vector<128x128xbf16>
    %cst_20 = arith.constant dense<0.000000e+00> : vector<8x128xf32>
    %35 = tpu.matmul %33, %34, %cst_20 {dimension_numbers = #tpu.dot_dimension_numbers<[1], [0], [0], [1], [0, 0, 1, 1], [], []>} : vector<8x128xbf16>, vector<128x128xbf16>, vector<8x128xf32> -> vector<8x128xf32>
    %c0_21 = arith.constant 0 : index
    %c0_22 = arith.constant 0 : index
    %36 = vector.load %arg9[%c0_21, %c0_22] : memref<1x128xf32, #tpu.memory_space<vmem>>, vector<1x128xf32>
    %37 = vector.broadcast %36 : vector<1x128xf32> to vector<8x128xf32>
    %38 = arith.addf %35, %37 : vector<8x128xf32>
    %39 = arith.truncf %38 : vector<8x128xf32> to vector<8x128xbf16>
    %c0_23 = arith.constant 0 : index
    %c0_24 = arith.constant 0 : index
    %40 = vector.load %arg10[%c0_23, %c0_24] : memref<8x128xbf16, #tpu.memory_space<vmem>>, vector<8x128xbf16>
    tpu.vector_store %arg10[%c0_23, %c0_24], %39 {strides = array<i32>} : memref<8x128xbf16, #tpu.memory_space<vmem>>, vector<8x128xbf16>,
    return
  }
  func.func @transform_0(%arg0: i32) -> (i32, i32) {
    %c0_i32 = arith.constant 0 : i32
    %c0_i32_0 = arith.constant 0 : i32
    return %arg0, %c0_i32 : i32, i32
  }
  func.func @transform_1(%arg0: i32) -> (i32, i32) {
    %c0_i32 = arith.constant 0 : i32
    %c0_i32_0 = arith.constant 0 : i32
    %c0_i32_1 = arith.constant 0 : i32
    return %c0_i32, %c0_i32_0 : i32, i32
  }
  func.func @transform_2(%arg0: i32) -> (i32, i32) {
    %c0_i32 = arith.constant 0 : i32
    %c0_i32_0 = arith.constant 0 : i32
    %c0_i32_1 = arith.constant 0 : i32
    return %c0_i32, %c0_i32_0 : i32, i32
  }
  func.func @transform_3(%arg0: i32) -> (i32, i32) {
    %c0_i32 = arith.constant 0 : i32
    %c0_i32_0 = arith.constant 0 : i32
    %c0_i32_1 = arith.constant 0 : i32
    return %c0_i32, %c0_i32_0 : i32, i32
  }
  func.func @transform_4(%arg0: i32) -> (i32, i32) {
    %c0_i32 = arith.constant 0 : i32
    %c0_i32_0 = arith.constant 0 : i32
    %c0_i32_1 = arith.constant 0 : i32
    return %c0_i32, %c0_i32_0 : i32, i32
  }
  func.func @transform_5(%arg0: i32) -> (i32, i32) {
    %c0_i32 = arith.constant 0 : i32
    %c0_i32_0 = arith.constant 0 : i32
    %c0_i32_1 = arith.constant 0 : i32
    return %c0_i32, %c0_i32_0 : i32, i32
  }
  func.func @transform_6(%arg0: i32) -> (i32, i32) {
    %c0_i32 = arith.constant 0 : i32
    %c0_i32_0 = arith.constant 0 : i32
    %c0_i32_1 = arith.constant 0 : i32
    return %c0_i32, %c0_i32_0 : i32, i32
  }
  func.func @transform_7(%arg0: i32) -> (i32, i32) {
    %c0_i32 = arith.constant 0 : i32
    %c0_i32_0 = arith.constant 0 : i32
    %c0_i32_1 = arith.constant 0 : i32
    return %c0_i32, %c0_i32_0 : i32, i32
  }
  func.func @transform_8(%arg0: i32) -> (i32, i32) {
    %c0_i32 = arith.constant 0 : i32
    %c0_i32_0 = arith.constant 0 : i32
    %c0_i32_1 = arith.constant 0 : i32
    return %c0_i32, %c0_i32_0 : i32, i32
  }
  func.func @transform_9(%arg0: i32) -> (i32, i32) {
    %c0_i32 = arith.constant 0 : i32
    %c0_i32_0 = arith.constant 0 : i32
    return %arg0, %c0_i32 : i32, i32
  }
}

</mosaic_0001>

<bundles_post_ra>
// kernel: sae_forward.1
= control target key start
LH: loop header
LB: loop body
LE: loop exit
PB: predicated region body
PF: predicated region fallthrough
CT: control target
= control target key end

     0   :  { %v706_v0 = vmov 0.0   ;;  %vm707_vm0 = vmmov 0   ;;  %s912_s1 = inlined_call_operand.vmem [shape: bf16[128,128], index: 1, kind: input, shape index: {}]   ;;  %s913_s0 = inlined_call_operand.vmem [shape: bf16[8,128], index: 0, kind: input, shape index: {}]   ;;  %s914_s3 = inlined_call_operand.vmem [shape: bf16[128,128], index: 3, kind: input, shape index: {}]   ;;  %s915_s2 = inlined_call_operand.vmem [shape: f32[1,128], index: 2, kind: input, shape index: {}]   ;;  %s916_s5 = inlined_call_operand.vmem [shape: bf16[128,128], index: 5, kind: input, shape index: {}]   ;;  %s917_s4 = inlined_call_operand.vmem [shape: f32[1,128], index: 4, kind: input, shape index: {}]   ;;  %s918_s7 = inlined_call_operand.vmem [shape: bf16[128,128], index: 7, kind: input, shape index: {}]   ;;  %s919_s6 = inlined_call_operand.vmem [shape: f32[1,128], index: 6, kind: input, shape index: {}]   ;;  %s920_s8 = inlined_call_operand.vmem [shape: f32[1,128], index: 8, kind: input, shape index: {}]   ;;  %s921_s9 = inlined_call_operand.vmem [shape: bf16[8,128], index: 9, kind: output, shape index: {}]  }
   0x1   :  { %580 = vmatprep.subr.bf16.mxu0 %v706_v0  ;;  %v662_v1 = vld [vmem:[%s912_s1 + $0x38] sm:$0xff]   ;;  %596 = vmatprep.mubr.msk.bf16.mxu0 %vm707_vm0, %v706_v0  ;;  %v663_v2 = vld [vmem:[%s912_s1 + $0x30] sm:$0xff]   ;;  %v664_v3 = vld [vmem:[%s912_s1 + $0x28] sm:$0xff]  }
   0x2   :  { %600 = vmatprep.subr.bf16.mxu1 %v706_v0  ;;  %616 = vmatprep.mubr.msk.bf16.mxu1 %vm707_vm0, %v706_v0  ;;  %v665_v4 = vld [vmem:[%s912_s1 + $0x20] sm:$0xff]   ;;  %v666_v5 = vld [vmem:[%s912_s1 + $0x18] sm:$0xff]   ;;  %v667_v6 = vld [vmem:[%s912_s1 + $0x10] sm:$0xff]  }
   0x3   :  { %581 = vmatpush3.bf16.msra.mxu0 %v662_v1  ;;  %v668_v7 = vld [vmem:[%s912_s1 + $0x8] sm:$0xff]   ;;  %v669_v8 = vld [vmem:[%s912_s1] sm:$0xff]   ;;  %v670_v10 = vld [vmem:[%s914_s3 + $0x38] sm:$0xff]  }
   0x4   :  { %582 = vmatprep.subr.bf16.mxu0 %v706_v0  ;;  %v33_v9 = vld [vmem:[%s913_s0] sm:$0xf]  ;;  %601 = vmatpush3.bf16.msra.mxu1 %v670_v10  ;;  %v671_v11 = vld [vmem:[%s914_s3 + $0x30] sm:$0xff]   ;;  %v672_v12 = vld [vmem:[%s914_s3 + $0x28] sm:$0xff]  }
   0x5   :  { %602 = vmatprep.subr.bf16.mxu1 %v706_v0  ;;  %v673_v13 = vld [vmem:[%s914_s3 + $0x20] sm:$0xff]   ;;  %v674_v14 = vld [vmem:[%s914_s3 + $0x18] sm:$0xff]   ;;  %v675_v15 = vld [vmem:[%s914_s3 + $0x10] sm:$0xff]  }
   0x6   :  { %v676_v16 = vld [vmem:[%s914_s3 + $0x8] sm:$0xff]   ;;  %v677_v17 = vld [vmem:[%s914_s3] sm:$0xff]   ;;  %v678_v29 = vld [vmem:[%s916_s5 + $0x38] sm:$0xff]  }
   0x7   :  { %583 = vmatpush3.bf16.msra.mxu0 %v663_v2  ;;  %v505_v18 = vld [vmem:[%s915_s2] ss:$0 sm:$0xff]  ;;  %v679_v30 = vld [vmem:[%s916_s5 + $0x30] sm:$0xff]   ;;  %v680_v31 = vld [vmem:[%s916_s5 + $0x28] sm:$0xff]  }
   0x8   :  { %584 = vmatprep.subr.bf16.mxu0 %v706_v0  ;;  %603 = vmatpush3.bf16.msra.mxu1 %v671_v11  ;;  %v681_v32 = vld [vmem:[%s916_s5 + $0x20] sm:$0xff]   ;;  %v682_v33 = vld [vmem:[%s916_s5 + $0x18] sm:$0xff]   ;;  %v683_v34 = vld [vmem:[%s916_s5 + $0x10] sm:$0xff]  }
   0x9   :  { %604 = vmatprep.subr.bf16.mxu1 %v706_v0  ;;  %v684_v35 = vld [vmem:[%s916_s5 + $0x8] sm:$0xff]   ;;  %v685_v36 = vld [vmem:[%s916_s5] sm:$0xff]   ;;  %v686_v48 = vld [vmem:[%s918_s7 + $0x38] sm:$0xff]  }
   0xa   :  { %v515_v37 = vld [vmem:[%s917_s4] ss:$0 sm:$0xff]  ;;  %v687_v49 = vld [vmem:[%s918_s7 + $0x30] sm:$0xff]   ;;  %v688_v50 = vld [vmem:[%s918_s7 + $0x28] sm:$0xff]  }
   0xb   :  { %585 = vmatpush3.bf16.msra.mxu0 %v664_v3  ;;  %v689_v51 = vld [vmem:[%s918_s7 + $0x20] sm:$0xff]   ;;  %v690_v52 = vld [vmem:[%s918_s7 + $0x18] sm:$0xff]   ;;  %v691_v53 = vld [vmem:[%s918_s7 + $0x10] sm:$0xff]  }
   0xc   :  { %586 = vmatprep.subr.bf16.mxu0 %v706_v0  ;;  %605 = vmatpush3.bf16.msra.mxu1 %v672_v12  ;;  %v692_v54 = vld [vmem:[%s918_s7 + $0x8] sm:$0xff]   ;;  %v693_v55 = vld [vmem:[%s918_s7] sm:$0xff]  }
   0xd   :  { %606 = vmatprep.subr.bf16.mxu1 %v706_v0  ;;  %v525_v56 = vld [vmem:[%s919_s6] ss:$0 sm:$0xff] }
   0xf   :  { %587 = vmatpush3.bf16.msra.mxu0 %v665_v4 }
  0x10   :  { %588 = vmatprep.subr.bf16.mxu0 %v706_v0  ;;  %607 = vmatpush3.bf16.msra.mxu1 %v673_v13 }
  0x11   :  { %608 = vmatprep.subr.bf16.mxu1 %v706_v0 }
  0x13   :  { %589 = vmatpush3.bf16.msra.mxu0 %v666_v5 }
  0x14   :  { %590 = vmatprep.subr.bf16.mxu0 %v706_v0  ;;  %609 = vmatpush3.bf16.msra.mxu1 %v674_v14 }
  0x15   :  { %610 = vmatprep.subr.bf16.mxu1 %v706_v0 }
  0x17   :  { %591 = vmatpush3.bf16.msra.mxu0 %v667_v6 }
  0x18   :  { %592 = vmatprep.subr.bf16.mxu0 %v706_v0  ;;  %611 = vmatpush3.bf16.msra.mxu1 %v675_v15 }
  0x19   :  { %612 = vmatprep.subr.bf16.mxu1 %v706_v0 }
  0x1b   :  { %593 = vmatpush3.bf16.msra.mxu0 %v668_v7 }
  0x1c   :  { %594 = vmatprep.subr.bf16.mxu0 %v706_v0  ;;  %613 = vmatpush3.bf16.msra.mxu1 %v676_v16 }
  0x1d   :  { %614 = vmatprep.subr.bf16.mxu1 %v706_v0 }
  0x1f   :  { %595 = vmatpush3.bf16.msra.mxu0 %v669_v8 }
  0x20   :  { %620 = vmatprep.subr.bf16.mxu0 %v706_v0  ;;  %615 = vmatpush3.bf16.msra.mxu1 %v677_v17 }
  0x21   :  { %640 = vmatprep.subr.bf16.mxu1 %v706_v0 }
  0x22   :  { %597 = vmatmul.mubr.bf16.vlgmr.msra.gmra.mxu0 %v33_v9 }
  0x23   :  { %636 = vmatprep.mubr.msk.bf16.mxu0 %vm707_vm0, %v706_v0  ;;  %621 = vmatpush3.bf16.msra.mxu0 %v678_v29 }
  0x24   :  { %622 = vmatprep.subr.bf16.mxu0 %v706_v0 }
  0x27   :  { %623 = vmatpush3.bf16.msra.mxu0 %v679_v30 }
  0x28   :  { %624 = vmatprep.subr.bf16.mxu0 %v706_v0 }
  0x2b   :  { %625 = vmatpush3.bf16.msra.mxu0 %v680_v31 }
  0x2c   :  { %626 = vmatprep.subr.bf16.mxu0 %v706_v0 }
  0x2f   :  { %627 = vmatpush3.bf16.msra.mxu0 %v681_v32 }
  0x30   :  { %628 = vmatprep.subr.bf16.mxu0 %v706_v0 }
  0x33   :  { %629 = vmatpush3.bf16.msra.mxu0 %v682_v33 }
  0x34   :  { %630 = vmatprep.subr.bf16.mxu0 %v706_v0 }
  0x37   :  { %631 = vmatpush3.bf16.msra.mxu0 %v683_v34 }
  0x38   :  { %632 = vmatprep.subr.bf16.mxu0 %v706_v0 }
  0x3b   :  { %633 = vmatpush3.bf16.msra.mxu0 %v684_v35 }
  0x3c   :  { %634 = vmatprep.subr.bf16.mxu0 %v706_v0 }
  0x3f   :  { %635 = vmatpush3.bf16.msra.mxu0 %v685_v36 }
  0xe2   :  { %v139_v19 = vpop.f32.mrf.mxu0 }
  0xe3   :  { %v140_v20 = vadd.f32 %v505_v18, %v139_v19 }
  0xe4   :  { %v598_v21 = vpop.f32.mrf.mxu0 }
  0xe5   :  { %v514_v22 = vmul.f32 -1.442695, %v140_v20 }
  0xe6   :  { %v142_v23 = vpop.f32.mrf.mxu0 }
  0xe7   :  { %694 = vpow2.f32 %v514_v22 }
  0xe8   :  { %v599_v24 = vpop.f32.mrf.mxu0 }
  0xf4   :  { %v695_v25 = vpop.eup %694 }
  0xf5   :  { %v148_v26 = vadd.f32 1.0, %v695_v25 }
  0xf7   :  { %696 = vrcp.f32 %v148_v26 }
 0x104   :  { %v697_v27 = vpop.eup %696 }
 0x105   :  { %v151_v28 = vpack.c.bf16 %v697_v27, %v697_v27 }
 0x107   :  { %617 = vmatmul.mubr.bf16.vlgmr.msra.gmra.mxu1 %v151_v28 }
 0x108   :  { %656 = vmatprep.mubr.msk.bf16.mxu1 %vm707_vm0, %v706_v0  ;;  %641 = vmatpush3.bf16.msra.mxu1 %v686_v48 }
 0x109   :  { %642 = vmatprep.subr.bf16.mxu1 %v706_v0 }
 0x10c   :  { %643 = vmatpush3.bf16.msra.mxu1 %v687_v49 }
 0x10d   :  { %644 = vmatprep.subr.bf16.mxu1 %v706_v0 }
 0x110   :  { %645 = vmatpush3.bf16.msra.mxu1 %v688_v50 }
 0x111   :  { %646 = vmatprep.subr.bf16.mxu1 %v706_v0 }
 0x114   :  { %647 = vmatpush3.bf16.msra.mxu1 %v689_v51 }
 0x115   :  { %648 = vmatprep.subr.bf16.mxu1 %v706_v0 }
 0x118   :  { %649 = vmatpush3.bf16.msra.mxu1 %v690_v52 }
 0x119   :  { %650 = vmatprep.subr.bf16.mxu1 %v706_v0 }
 0x11c   :  { %651 = vmatpush3.bf16.msra.mxu1 %v691_v53 }
 0x11d   :  { %652 = vmatprep.subr.bf16.mxu1 %v706_v0 }
 0x120   :  { %653 = vmatpush3.bf16.msra.mxu1 %v692_v54 }
 0x121   :  { %654 = vmatprep.subr.bf16.mxu1 %v706_v0  ;;  %v535_v0 = vld [vmem:[%s920_s8] ss:$0 sm:$0xff] }
 0x124   :  { %655 = vmatpush3.bf16.msra.mxu1 %v693_v55 }
 0x1c7   :  { %v257_v38 = vpop.f32.mrf.mxu1 }
 0x1c8   :  { %v258_v39 = vadd.f32 %v515_v37, %v257_v38 }
 0x1c9   :  { %v618_v40 = vpop.f32.mrf.mxu1 }
 0x1ca   :  { %v524_v41 = vmul.f32 -1.442695, %v258_v39 }
 0x1cb   :  { %v260_v42 = vpop.f32.mrf.mxu1 }
 0x1cc   :  { %698 = vpow2.f32 %v524_v41 }
 0x1cd   :  { %v619_v43 = vpop.f32.mrf.mxu1 }
 0x1d9   :  { %v699_v44 = vpop.eup %698 }
 0x1da   :  { %v266_v45 = vadd.f32 1.0, %v699_v44 }
 0x1dc   :  { %700 = vrcp.f32 %v266_v45 }
 0x1e9   :  { %v701_v46 = vpop.eup %700 }
 0x1ea   :  { %v269_v47 = vpack.c.bf16 %v701_v46, %v701_v46 }
 0x1ec   :  { %637 = vmatmul.mubr.bf16.vlgmr.msra.gmra.mxu0 %v269_v47 }
 0x2ac   :  { %v375_v57 = vpop.f32.mrf.mxu0 }
 0x2ad   :  { %v376_v58 = vadd.f32 %v525_v56, %v375_v57 }
 0x2ae   :  { %v638_v59 = vpop.f32.mrf.mxu0 }
 0x2af   :  { %v534_v60 = vmul.f32 -1.442695, %v376_v58 }
 0x2b0   :  { %v378_v61 = vpop.f32.mrf.mxu0 }
 0x2b1   :  { %702 = vpow2.f32 %v534_v60 }
 0x2b2   :  { %v639_v62 = vpop.f32.mrf.mxu0 }
 0x2be   :  { %v703_v63 = vpop.eup %702 }
 0x2bf   :  { %v384_v1 = vadd.f32 1.0, %v703_v63 }
 0x2c1   :  { %704 = vrcp.f32 %v384_v1 }
 0x2ce   :  { %v705_v2 = vpop.eup %704 }
 0x2cf   :  { %v387_v3 = vpack.c.bf16 %v705_v2, %v705_v2 }
 0x2d1   :  { %657 = vmatmul.mubr.bf16.vlgmr.msra.gmra.mxu1 %v387_v3 }
 0x391   :  { %v493_v4 = vpop.f32.mrf.mxu1 }
 0x392   :  { %v494_v5 = vadd.f32 %v535_v0, %v493_v4 }
 0x393   :  { %v658_v6 = vpop.f32.mrf.mxu1 }
 0x394   :  { %v499_v7 = vpack.c.bf16 %v494_v5, %v494_v5 }
 0x395   :  { %v496_v8 = vpop.f32.mrf.mxu1 }
 0x396   :  { %500 = vst [vmem:[%s921_s9] sm:$0xf] %v499_v7 }
 0x397   :  { %v659_v9 = vpop.f32.mrf.mxu1 }

</bundles_post_ra>
